<compile_context>
chip_gen: v7x
topology: tpu7x:2x2x1
jax: 0.10.0
libtpu: 0.0.40
codegen_flags: <defaults>
</compile_context>

<pallas_src>
import functools

import jax
import jax.numpy as jnp
from jax import lax
from jax.experimental import pallas as pl
from jax.experimental.pallas import tpu as pltpu


def _pcme_tile_kernel(q_ref, t_ref, loss_ref, *recall_refs, inv_temp, tile_q,
                      single_tile, with_recall):
    """One query tile (TQ rows) against all Bt pre-normalized bf16 targets."""
    q = q_ref[...].astype(jnp.float32)                          # [TQ, D]
    # l2-normalize queries; fold 1/temperature into the scale so `logits`
    # comes straight out of the matmul (argmax is scale-invariant).
    qn = q * (lax.rsqrt(jnp.sum(q * q, axis=-1, keepdims=True)) * inv_temp)
    qb = qn.astype(jnp.bfloat16)

    tb = t_ref[...]                                             # [Bt, D] bf16

    # MXU on bf16 operands, f32 accumulation:  logits = (qn / temp) @ tn.T
    logits = lax.dot_general(qb, tb, (((1,), (1,)), ((), ())),
                             preferred_element_type=jnp.float32)  # [TQ, Bt]

    # Matched-pair (diagonal) logit: row-wise dot over D against the matching
    # rows of the resident normalized buffer (no separate DMA stream, same
    # bf16 values as the corresponding logits column; only the summation
    # order differs from the MXU at ULP level).
    if single_tile:
        td = tb                                                  # [TQ, D]
    else:
        row0 = pl.multiple_of(pl.program_id(0) * tile_q, 16)     # bf16-aligned
        td = t_ref[pl.ds(row0, tile_q), :]                       # [TQ, D] bf16
    diag = jnp.sum(qb.astype(jnp.float32) * td.astype(jnp.float32),
                   axis=-1, keepdims=True)                       # [TQ, 1]

    # Numerically stable log-sum-exp over the class (lane) axis.
    m = jnp.max(logits, axis=-1, keepdims=True)                  # [TQ, 1]
    p = jnp.exp(logits - m)
    lse = m + jnp.log(jnp.sum(p, axis=-1, keepdims=True))        # [TQ, 1]
    loss_ref[...] = jnp.sum(lse - diag, keepdims=True)           # (1, 1)

    if with_recall:
        cmax_ref, arow_ref = recall_refs
        # Per-column max over this tile's rows plus the tile-local row index
        # of the first maximum; the global offset is added to the [1, Bt]
        # result, not to the [TQ, Bt] iota.
        # TODO(synk): replace the iota/where/min with a sublane argmax once
        # variadic reductions lower reliably in Mosaic.
        col_max = jnp.max(logits, axis=0, keepdims=True)         # [1, Bt]
        rows = lax.broadcasted_iota(jnp.int32, logits.shape, 0)
        local_arg = jnp.min(jnp.where(logits == col_max, rows, tile_q),
                            axis=0, keepdims=True)               # [1, Bt]
        cmax_ref[...] = col_max
        arow_ref[...] = local_arg + pl.program_id(0) * tile_q


def _device_vmem_cap_bytes():
    """Usable per-kernel VMEM budget derived from the actual device."""
    try:
        cap = int(pltpu.get_tpu_info().vmem_capacity_bytes)
    except Exception:                      # pragma: no cover - conservative
        cap = 64 << 20                     # v7x-sized fallback
    # Leave headroom for compiler-internal scratch: ~100 MiB on 128 MiB parts
    # (v5e/v6e), ~48 MiB on the 64 MiB v7x part.
    return max(32 << 20, min(int(cap * 0.8), cap - (16 << 20)))


def _vmem_estimate(tq, bt, dp, with_recall):
    f32 = 4
    n_tile_tmp = 6 if with_recall else 3   # logits, exp (+ iota, cmp, select)
    out_bytes = (2 * (2 * bt * f32 + f32)) if with_recall else (2 * f32)
    return int(
        2 * tq * dp * f32                  # double-buffered f32 query tile
        + bt * dp * 2                      # resident bf16 targets (1 buffer)
        + 2 * tq * dp * 2                  # bf16 q copy + matched-row slice
        + 2 * tq * dp * f32                # f32 query-normalization temps
        + n_tile_tmp * tq * bt * f32       # [TQ, Bt] temporaries
        + out_bytes                        # double-buffered per-tile outputs
        + (4 << 20)                        # headroom
    )


def _default_query_tile(bq, bt, dp, vmem_cap):
    # Single full tile for small / ragged batches (also avoids any in-kernel
    # dynamic slicing of the packed bf16 target buffer).
    if bq % 16 != 0:
        return bq
    tq = 256
    # Keep g >= 2 so both v7x TensorCores get work on the parallel axis.
    while tq > 16 and (bq % tq != 0 or bq // tq < 2):
        tq //= 2
    if bq % tq != 0 or bq // tq < 2:
        return bq
    # Shrink further if the [TQ, Bt] temporaries would not fit comfortably.
    while tq > 16 and _vmem_estimate(tq, bt, dp, True) > vmem_cap:
        tq //= 2
    return tq


def pcme_retrieval_loss(query_features, target_features, *, temperature,
                        reduction='mean', recall=False, query_tile=None):
    """JAX/Pallas equivalent of PcmeRetrievalLoss.forward (2-D features)."""
    if reduction not in ('mean', 'sum'):
        raise NotImplementedError("only 'mean' / 'sum' reductions supported")
    bq, d = query_features.shape
    bt, d_t = target_features.shape
    if d != d_t:
        raise ValueError("query/target feature dims must match")
    if bq != bt:
        raise ValueError("PcmeRetrievalLoss requires matched batches (Bq == Bt)")

    # Pad the feature (lane) dim to a multiple of 128: exact (zero columns add
    # nothing to norms or dot products) and keeps the MXU / DMA lane-dense.
    dp = d if d % 128 == 0 else ((d + 127) // 128) * 128
    if dp != d:
        pad = ((0, 0), (0, dp - d))
        q_in = jnp.pad(query_features, pad)
        t_in = jnp.pad(target_features, pad)
    else:
        q_in, t_in = query_features, target_features

    # Pre-normalize targets ONCE (and cast to bf16) outside the kernel; the
    # bf16 matrix is what stays VMEM-resident.
    t32 = t_in.astype(jnp.float32)
    t_norm = (t32 * lax.rsqrt(jnp.sum(t32 * t32, axis=-1, keepdims=True))
              ).astype(jnp.bfloat16)

    vmem_cap = _device_vmem_cap_bytes()
    tq = (_default_query_tile(bq, bt, dp, vmem_cap) if query_tile is None
          else int(query_tile))
    if bq % tq != 0:
        raise ValueError(f"query tile {tq} must divide batch {bq}")
    g = bq // tq
    if g > 1 and tq % 16 != 0:
        raise ValueError("multi-tile query_tile must be a multiple of 16 "
                         "(bf16 sublane packing for the in-kernel diag slice)")

    kernel = functools.partial(
        _pcme_tile_kernel,
        inv_temp=1.0 / float(temperature),
        tile_q=tq,
        single_tile=(g == 1),
        with_recall=bool(recall),
    )

    est = _vmem_estimate(tq, bt, dp, bool(recall))
    vmem_limit = int(min(max(est, 16 << 20), vmem_cap))

    epi = 6 if recall else 3
    cost = pl.CostEstimate(
        flops=int(2 * bq * bt * dp + 6 * bq * dp + epi * bq * bt),
        transcendentals=int(bq * bt + 2 * bq),
        bytes_accessed=int(bq * dp * 4 + bt * dp * 2 + g * 4
                           + (2 * g * bt * 4 if recall else 0)),
    )

    in_specs = [
        pl.BlockSpec((tq, dp), lambda i: (i, 0)),                 # query tile
        pl.BlockSpec((bt, dp), lambda i: (0, 0),
                     pipeline_mode=pl.Buffered(1)),               # resident t
    ]
    if recall:
        out_specs = (
            pl.BlockSpec((None, 1, 1), lambda i: (i, 0, 0)),      # loss sum
            pl.BlockSpec((None, 1, bt), lambda i: (i, 0, 0)),     # col max
            pl.BlockSpec((None, 1, bt), lambda i: (i, 0, 0)),     # arg row
        )
        out_shape = (
            jax.ShapeDtypeStruct((g, 1, 1), jnp.float32),
            jax.ShapeDtypeStruct((g, 1, bt), jnp.float32),
            jax.ShapeDtypeStruct((g, 1, bt), jnp.int32),
        )
    else:
        out_specs = pl.BlockSpec((None, 1, 1), lambda i: (i, 0, 0))
        out_shape = jax.ShapeDtypeStruct((g, 1, 1), jnp.float32)

    outs = pl.pallas_call(
        kernel,
        grid=(g,),
        in_specs=in_specs,
        out_specs=out_specs,
        out_shape=out_shape,
        compiler_params=pltpu.CompilerParams(
            dimension_semantics=("parallel",),
            vmem_limit_bytes=vmem_limit),
        cost_estimate=cost,
    )(q_in, t_norm)

    if recall:
        loss_parts, col_max, arg_row = outs
    else:
        loss_parts = outs

    # Tiny cross-tile reductions in plain JAX (G and G x Bt elements).
    loss_sum = jnp.sum(loss_parts)
    loss = loss_sum / bq if reduction == 'mean' else loss_sum
    if not recall:
        return loss

    cmax = col_max[:, 0, :]                  # (G, Bt)
    arow = arg_row[:, 0, :]                  # (G, Bt)
    best_tile = jnp.argmax(cmax, axis=0)     # first occurrence -> lowest rows
    best_row = jnp.take_along_axis(arow, best_tile[None, :], axis=0)[0]
    rec = jnp.sum((best_row == jnp.arange(bt)).astype(jnp.int32))
    return loss, rec


# ----------------------------- references ----------------------------------


def _reference_f32(q, t, temperature):
    """Pure-f32 PyTorch-semantics reference."""
    qn = q / jnp.linalg.norm(q, axis=-1, keepdims=True)
    tn = t / jnp.linalg.norm(t, axis=-1, keepdims=True)
    scores = qn @ tn.T
    logits = scores / temperature
    logp = jax.nn.log_softmax(logits, axis=-1)
    labels = jnp.arange(scores.shape[1])
    loss = -jnp.mean(logp[jnp.arange(scores.shape[0]), labels])
    rec = jnp.sum(jnp.argmax(scores, axis=0) == jnp.arange(scores.shape[0]))
    return loss, rec


def _reference_bf16_mirrored(q, t, temperature):
    """Same math with the kernel's bf16 MXU rounding, for a tight check."""
    inv_temp = 1.0 / float(temperature)
    qn = q * (lax.rsqrt(jnp.sum(q * q, axis=-1, keepdims=True)) * inv_temp)
    tn = t * lax.rsqrt(jnp.sum(t * t, axis=-1, keepdims=True))
    qb = qn.astype(jnp.bfloat16).astype(jnp.float32)
    tb = tn.astype(jnp.bfloat16).astype(jnp.float32)
    logits = qb @ tb.T
    diag = jnp.sum(qb * tb, axis=-1)
    loss = jnp.mean(jax.nn.logsumexp(logits, axis=-1) - diag)
    rec = jnp.sum(jnp.argmax(logits, axis=0) == jnp.arange(q.shape[0]))
    return loss, rec


if __name__ == "__main__":
    key = jax.random.PRNGKey(0)
    temperature = 0.07      # config.temperature (deterministic in-script)

    def run_case(batch, dim, query_tile=None):
        kq, kn = jax.random.split(jax.random.fold_in(key, batch * 1000 + dim))
        q = jax.random.normal(kq, (batch, dim), dtype=jnp.float32)
        # matched (correlated) query/target pairs -- the realistic retrieval
        # setup; keeps the recall argmax far from bf16-induced ties.
        t = q + 0.5 * jax.random.normal(kn, (batch, dim), dtype=jnp.float32)

        loss, rec = pcme_retrieval_loss(q, t, temperature=temperature,
                                        reduction='mean', recall=True,
                                        query_tile=query_tile)
        loss_sum = pcme_retrieval_loss(q, t, temperature=temperature,
                                       reduction='sum', recall=False,
                                       query_tile=query_tile)
        jax.block_until_ready((loss, rec, loss_sum))

        loss_f32, rec_f32 = _reference_f32(q, t, temperature)
        loss_mir, rec_mir = _reference_bf16_mirrored(q, t, temperature)

        # Tight check against the precision-mirrored reference.
        assert jnp.allclose(loss, loss_mir, atol=1e-3, rtol=1e-2), (loss, loss_mir)
        # Looser semantic check against the pure-f32 reference (bf16 MXU).
        assert jnp.allclose(loss, loss_f32, atol=5e-3, rtol=2e-1), (loss, loss_f32)
        # Loss-only kernel variant must agree with the recall variant.
        assert jnp.allclose(loss_sum, loss * batch, atol=1e-4, rtol=1e-4), (
            loss_sum, loss * batch)
        assert int(rec) == int(rec_f32) == int(rec_mir), (rec, rec_f32, rec_mir)

    run_case(8, 32)                    # single tile, padded D, no dyn slice
    run_case(32, 32, query_tile=16)    # two tiles: dyn-sliced diag + combine
    run_case(64, 256)                  # default tiling, lane-aligned D
    print("KERNEL_OK")
</pallas_src>

<mosaic_0001>
module attributes {stable_mosaic.version = 11 : i64} {
  func.func @_pcme_tile_kernel(%arg0: i32, %arg1: memref<8x128xf32, #tpu.memory_space<vmem>>, %arg2: memref<8x128xbf16, #tpu.memory_space<vmem>>, %arg3: memref<1x1x1xf32, #tpu.memory_space<vmem>>, %arg4: memref<1x1x8xf32, #tpu.memory_space<vmem>>, %arg5: memref<1x1x8xi32, #tpu.memory_space<vmem>>) attributes {dimension_semantics = [#tpu.dimension_semantics<parallel>], iteration_bounds = array<i64: 1>, scalar_prefetch = 0 : i64, scratch_operands = 0 : i64, tpu.core_type = #tpu.core_type<tc>, window_params = [{transform_indices = @transform_0, window_bounds = array<i64: 8, 128>}, {pipeline_mode = #tpu.pipeline_mode<synchronous>, transform_indices = @transform_1, window_bounds = array<i64: 8, 128>}, {transform_indices = @transform_2, window_bounds = array<i64: 1, 1, 1>}, {transform_indices = @transform_3, window_bounds = array<i64: 1, 1, 8>}, {transform_indices = @transform_4, window_bounds = array<i64: 1, 1, 8>}]} {
    %c0 = arith.constant 0 : index
    %c0_0 = arith.constant 0 : index
    %0 = vector.load %arg1[%c0, %c0_0] : memref<8x128xf32, #tpu.memory_space<vmem>>, vector<8x128xf32>
    %1 = arith.mulf %0, %0 : vector<8x128xf32>
    %cst = arith.constant dense<0.000000e+00> : vector<8xf32>
    %2 = vector.multi_reduction <add>, %1, %cst [1] : vector<8x128xf32> to vector<8xf32>
    %3 = vector.shape_cast %2 : vector<8xf32> to vector<8x1xf32>
    %4 = math.rsqrt %3 : vector<8x1xf32>
    %cst_1 = arith.constant 14.2857141 : f32
    %5 = vector.broadcast %cst_1 : f32 to vector<8x1xf32>
    %6 = arith.mulf %4, %5 : vector<8x1xf32>
    %7 = vector.broadcast %6 : vector<8x1xf32> to vector<8x128xf32>
    %8 = arith.mulf %0, %7 : vector<8x128xf32>
    %9 = arith.truncf %8 : vector<8x128xf32> to vector<8x128xbf16>
    %c0_2 = arith.constant 0 : index
    %c0_3 = arith.constant 0 : index
    %10 = vector.load %arg2[%c0_2, %c0_3] : memref<8x128xbf16, #tpu.memory_space<vmem>>, vector<8x128xbf16>
    %cst_4 = arith.constant dense<0.000000e+00> : vector<8x8xf32>
    %11 = tpu.matmul %9, %10, %cst_4 {dimension_numbers = #tpu.dot_dimension_numbers<[1], [1], [0], [0], [0, 0, 1, 0], [], []>} : vector<8x128xbf16>, vector<8x128xbf16>, vector<8x8xf32> -> vector<8x8xf32>
    %12 = arith.extf %9 : vector<8x128xbf16> to vector<8x128xf32>
    %13 = arith.extf %10 : vector<8x128xbf16> to vector<8x128xf32>
    %14 = arith.mulf %12, %13 : vector<8x128xf32>
    %cst_5 = arith.constant dense<0.000000e+00> : vector<8xf32>
    %15 = vector.multi_reduction <add>, %14, %cst_5 [1] : vector<8x128xf32> to vector<8xf32>
    %16 = vector.shape_cast %15 : vector<8xf32> to vector<8x1xf32>
    %cst_6 = arith.constant dense<0xFF800000> : vector<8xf32>
    %17 = vector.multi_reduction <maximumf>, %11, %cst_6 [1] : vector<8x8xf32> to vector<8xf32>
    %18 = vector.shape_cast %17 : vector<8xf32> to vector<8x1xf32>
    %19 = vector.broadcast %18 : vector<8x1xf32> to vector<8x8xf32>
    %20 = arith.subf %11, %19 : vector<8x8xf32>
    %21 = math.exp %20 : vector<8x8xf32>
    %cst_7 = arith.constant dense<0.000000e+00> : vector<8xf32>
    %22 = vector.multi_reduction <add>, %21, %cst_7 [1] : vector<8x8xf32> to vector<8xf32>
    %23 = vector.shape_cast %22 : vector<8xf32> to vector<8x1xf32>
    %24 = math.log %23 : vector<8x1xf32>
    %25 = arith.addf %18, %24 : vector<8x1xf32>
    %26 = arith.subf %25, %16 : vector<8x1xf32>
    %27 = vector.shape_cast %26 : vector<8x1xf32> to vector<1x8x1xf32>
    %cst_8 = arith.constant dense<0.000000e+00> : vector<1xf32>
    %28 = vector.multi_reduction <add>, %27, %cst_8 [1, 2] : vector<1x8x1xf32> to vector<1xf32>
    %29 = vector.shape_cast %28 : vector<1xf32> to vector<1x1x1xf32>
    %30 = vector.extract %29[0, 0, 0] : f32 from vector<1x1x1xf32>
    %31 = vector.broadcast %30 : f32 to vector<1x1xf32>
    %c0_9 = arith.constant 0 : index
    %c0_10 = arith.constant 0 : index
    %c0_11 = arith.constant 0 : index
    %32 = vector.load %arg3[%c0_9, %c0_10, %c0_11] : memref<1x1x1xf32, #tpu.memory_space<vmem>>, vector<1x1x1xf32>
    %33 = vector.shape_cast %32 : vector<1x1x1xf32> to vector<1x1xf32>
    %34 = vector.shape_cast %31 : vector<1x1xf32> to vector<1x1x1xf32>
    tpu.vector_store %arg3[%c0_9, %c0_10, %c0_11], %34 {strides = array<i32>} : memref<1x1x1xf32, #tpu.memory_space<vmem>>, vector<1x1x1xf32>,
    %cst_12 = arith.constant dense<0xFF800000> : vector<8xf32>
    %35 = vector.multi_reduction <maximumf>, %11, %cst_12 [0] : vector<8x8xf32> to vector<8xf32>
    %36 = vector.shape_cast %35 : vector<8xf32> to vector<1x8xf32>
    %37 = tpu.iota {dimensions = array<i32: 0>} : vector<8x8xi32>
    %38 = vector.broadcast %36 : vector<1x8xf32> to vector<8x8xf32>
    %39 = arith.cmpf oeq, %11, %38 : vector<8x8xf32>
    %c8_i32 = arith.constant 8 : i32
    %40 = vector.broadcast %c8_i32 : i32 to vector<8x8xi32>
    %41 = arith.select %39, %37, %40 : vector<8x8xi1>, vector<8x8xi32>
    %cst_13 = arith.constant dense<2147483647> : vector<8xi32>
    %42 = vector.multi_reduction <minsi>, %41, %cst_13 [0] : vector<8x8xi32> to vector<8xi32>
    %43 = vector.shape_cast %42 : vector<8xi32> to vector<1x8xi32>
    %c0_14 = arith.constant 0 : index
    %c0_15 = arith.constant 0 : index
    %c0_16 = arith.constant 0 : index
    %44 = vector.load %arg4[%c0_14, %c0_15, %c0_16] : memref<1x1x8xf32, #tpu.memory_space<vmem>>, vector<1x1x8xf32>
    %45 = vector.shape_cast %44 : vector<1x1x8xf32> to vector<1x8xf32>
    %46 = vector.shape_cast %36 : vector<1x8xf32> to vector<1x1x8xf32>
    tpu.vector_store %arg4[%c0_14, %c0_15, %c0_16], %46 {strides = array<i32>} : memref<1x1x8xf32, #tpu.memory_space<vmem>>, vector<1x1x8xf32>,
    %c8_i32_17 = arith.constant 8 : i32
    %47 = arith.muli %arg0, %c8_i32_17 : i32
    %48 = vector.broadcast %47 : i32 to vector<1x8xi32>
    %49 = arith.addi %43, %48 : vector<1x8xi32>
    %c0_18 = arith.constant 0 : index
    %c0_19 = arith.constant 0 : index
    %c0_20 = arith.constant 0 : index
    %50 = vector.load %arg5[%c0_18, %c0_19, %c0_20] : memref<1x1x8xi32, #tpu.memory_space<vmem>>, vector<1x1x8xi32>
    %51 = vector.shape_cast %50 : vector<1x1x8xi32> to vector<1x8xi32>
    %52 = vector.shape_cast %49 : vector<1x8xi32> to vector<1x1x8xi32>
    tpu.vector_store %arg5[%c0_18, %c0_19, %c0_20], %52 {strides = array<i32>} : memref<1x1x8xi32, #tpu.memory_space<vmem>>, vector<1x1x8xi32>,
    return
  }
  func.func @transform_0(%arg0: i32) -> (i32, i32) {
    %c0_i32 = arith.constant 0 : i32
    %c0_i32_0 = arith.constant 0 : i32
    return %arg0, %c0_i32 : i32, i32
  }
  func.func @transform_1(%arg0: i32) -> (i32, i32) {
    %c0_i32 = arith.constant 0 : i32
    %c0_i32_0 = arith.constant 0 : i32
    %c0_i32_1 = arith.constant 0 : i32
    return %c0_i32, %c0_i32_0 : i32, i32
  }
  func.func @transform_2(%arg0: i32) -> (i32, i32, i32) {
    %c0_i32 = arith.constant 0 : i32
    %c0_i32_0 = arith.constant 0 : i32
    %c0_i32_1 = arith.constant 0 : i32
    return %arg0, %c0_i32, %c0_i32_0 : i32, i32, i32
  }
  func.func @transform_3(%arg0: i32) -> (i32, i32, i32) {
    %c0_i32 = arith.constant 0 : i32
    %c0_i32_0 = arith.constant 0 : i32
    %c0_i32_1 = arith.constant 0 : i32
    return %arg0, %c0_i32, %c0_i32_0 : i32, i32, i32
  }
  func.func @transform_4(%arg0: i32) -> (i32, i32, i32) {
    %c0_i32 = arith.constant 0 : i32
    %c0_i32_0 = arith.constant 0 : i32
    %c0_i32_1 = arith.constant 0 : i32
    return %arg0, %c0_i32, %c0_i32_0 : i32, i32, i32
  }
}

</mosaic_0001>

<bundles_post_ra>
// kernel: tpu_custom_call.1
= control target key start
LH: loop header
LB: loop body
LE: loop exit
PB: predicated region body
PF: predicated region fallthrough
CT: control target
= control target key end

     0   :  { %10 = vsyncpa [#allocation3], 0  ;;  %s428_s0 = inlined_call_operand.hbm [shape: f32[8,128], index: 0, kind: input, shape index: {}]   ;;  %s429_s1 = inlined_call_operand.hbm [shape: bf16[8,128], index: 1, kind: input, shape index: {}]   ;;  %s430_s2 = inlined_call_operand.hbm [shape: f32[1,1,1], index: 2, kind: output, shape index: {0}]   ;;  %s431_s3 = inlined_call_operand.hbm [shape: f32[1,1,8], index: 3, kind: output, shape index: {1}]   ;;  %s432_s4 = inlined_call_operand.hbm [shape: s32[1,1,8], index: 4, kind: output, shape index: {2}]  }
   0x1   :  { %11 = vsyncpa [#allocation6], 0 }
   0x2   :  { %12 = vsyncpa [#allocation4], 0 }
   0x3   :  { %13 = vsyncpa [#allocation9], 0  ;;  %s333_s15 = smov [#allocation2]   ;;  %s334_s17 = smov [#allocation5]  }
   0x4   :  { %s20_s16 = sshll.u32 %s333_s15, 4  ;;  %s30_s18 = sshll.u32 %s334_s17, 4  ;;  %s21_s16 = int_to_ptr.vmem [resolvable:$true] %s20_s16  ;;  %s31_s18 = int_to_ptr.vmem [resolvable:$true] %s30_s18 }
   0x5   :  { %s215_s21 = scalar_lea.hbm %s428_s0, 128 }
   0x6   :  { %p216_p0 = scmp.ne.s32.totalorder %s428_s0, %s215_s21  ;;  %p219_p1 = scmp.lt.u32.totalorder %s215_s21, %s428_s0 }
   0x8   :  { %p221_p2 = pnand %p219_p1, %p216_p0 }
   0xa   :  { %224 = shalt.err (!%p221_p2)
}
   0xb   :  { %s225_s26 = scalar_lea.vmem %s21_s16, 128  ;;  %p230_p4 = scmp.lt.s32.totalorder %s21_s16, %s21_s16 }
   0xc   :  { %p226_p3 = scmp.ne.s32.totalorder %s21_s16, %s225_s26  ;;  %p231_p5 = scmp.lt.s32.totalorder %s225_s26, %s225_s26 }
   0xe   :  { %p232_p6 = por %p231_p5, %p230_p4 }
  0x10   :  { %p233_p7 = pnand %p232_p6, %p226_p3 }
  0x12   :  { %236 = shalt.err (!%p233_p7)
}
  0x13   :  { %23 = dma.hbm_to_vmem [thread:$0]  %s428_s0, 128, %s21_s16, [#allocation3]  }
  0x14   :  { %s237_s5 = scalar_lea.hbm %s429_s1, 64 }
  0x15   :  { %p238_p8 = scmp.ne.s32.totalorder %s429_s1, %s237_s5  ;;  %p241_p9 = scmp.lt.u32.totalorder %s237_s5, %s429_s1 }
  0x17   :  { %p243_p10 = pnand %p241_p9, %p238_p8 }
  0x19   :  { %246 = shalt.err (!%p243_p10)
}
  0x1a   :  { %s247_s10 = scalar_lea.vmem %s31_s18, 64  ;;  %p252_p12 = scmp.lt.s32.totalorder %s31_s18, %s31_s18 }
  0x1b   :  { %p248_p11 = scmp.ne.s32.totalorder %s31_s18, %s247_s10  ;;  %p253_p13 = scmp.lt.s32.totalorder %s247_s10, %s247_s10 }
  0x1d   :  { %p254_p0 = por %p253_p13, %p252_p12 }
  0x1f   :  { %p255_p1 = pnand %p254_p0, %p248_p11 }
  0x21   :  { %258 = shalt.err (!%p255_p1)
}
  0x22   :  { %33 = dma.hbm_to_vmem [thread:$0]  %s429_s1, 64, %s31_s18, [#allocation6]  }
  0x23   :  { %325 = dma.done.wait [#allocation3], 128  }
  0x24   :  { %326 = vsyncadd [#allocation3], 4294967168 }
  0x25   :  { %327 = dma.done.wait [#allocation6], 64  }
  0x26   :  { %328 = vsyncadd [#allocation6], 4294967232  ;;  %v41_v0 = vld [vmem:[#allocation2] sm:$0xff]  ;;  %v335_v2 = vmov 0.0   ;;  %v49_v3 = vld [vmem:[#allocation5] sm:$0xf]  ;;  %v129_v20 = vlaneseq }
  0x27   :  { %v42_v1 = vmul.f32 %v41_v0, %v41_v0  ;;  %194 = vmatprep.subr.bf16.mxu0 %v335_v2  ;;  %vm336_vm0 = vmmov 0   ;;  %v91_v8 = vunpack.c.l.bf16 %v49_v3  ;;  %vm95_vm1 = vcmask 64512   ;;  %s337_s1 = smov [#allocation8]  }
  0x28   :  { %195 = vmatpush3.bf16.xpose.msra.mxu0 %v49_v3  ;;  %196 = vmatprep.mubr.msk.bf16.mxu0 %vm336_vm0, %v335_v2  ;;  %v130_v23 = vshrl.u32 %v129_v20, 7  ;;  %vm143_vm2 = vcmask 57344   ;;  %vm109_vm7 = vcmask 7168   ;;  %s165_s12 = sshll.u32 %s337_s1, 4  ;;  %s166_s12 = int_to_ptr.vmem [resolvable:$true] %s165_s12 }
  0x29   :  { %43 = vadd.xlane.f32.xlu0 %v42_v1  ;;  %s259_s13 = scalar_lea.vmem %s166_s12, 16  ;;  %s263_s14 = scalar_lea.vmem %s166_s12, 32 }
  0x2a   :  { %p260_p2 = scmp.ne.s32.totalorder %s166_s12, %s259_s13  ;;  %p264_p3 = scmp.lt.s32.totalorder %s166_s12, %s166_s12 }
  0x2b   :  { %p265_p4 = scmp.lt.s32.totalorder %s263_s14, %s259_s13 }
  0x2d   :  { %p266_p5 = por %p265_p4, %p264_p3 }
  0x2f   :  { %p267_p6 = pnand %p266_p5, %p260_p2 }
  0xb6   :  { %v44_v4 = vpop.xlane.xlu0 %43 }
  0xb7   :  { %209 = vrsqrt.f32 %v44_v4 }
  0xc1   :  { %v210_v5 = vpop.eup %209 }
  0xc2   :  { %v46_v6 = vmul.f32 14.285714, %v210_v5 }
  0xc4   :  { %v47_v7 = vmul.f32 %v46_v6, %v41_v0 }
  0xc6   :  { %v48_v9 = vpack.c.bf16 %v47_v7, %v47_v7 }
  0xc8   :  { %197 = vmatmul.mubr.bf16.vlgmr.msra.gmra.mrb[0].mxu0 %v48_v9  ;;  %v90_v10 = vunpack.c.l.bf16 %v48_v9 }
  0xca   :  { %v92_v11 = vmul.f32 %v91_v8, %v90_v10 }
 0x19b   :  { %v84_v12 = vpop.f32.mrb[0].mxu0 }
 0x19c   :  { %v198_v13 = vpop.f32.mrb[1].mxu0  ;;  %v96_v14 = vsel %vm95_vm1, %v84_v12, -inf }
 0x19d   :  { %97 = vmax.xlane.f32.xlu0 %v96_v14  ;;  %v123_v15 = vrot.slane %v96_v14, 4  ;;  %v87_v16 = vpop.f32.mrb[2].mxu0 }
 0x19e   :  { %v199_v17 = vpop.f32.mrb[3].mxu0 }
 0x19f   :  { %v124_v18 = vmax.f32 %v96_v14, %v123_v15 }
 0x1a1   :  { %v125_v19 = vrot.slane %v124_v18, 2 }
 0x1a3   :  { %v126_v21 = vmax.f32 %v124_v18, %v125_v19 }
 0x1a5   :  { %v127_v22 = vrot.slane %v126_v21, 1 }
 0x1a7   :  { %v128_v24 = vmax.f32 %v126_v21, %v127_v22 }
 0x1a9   :  { %vm131_vm3 = vcmp.eq.f32.partialorder %v84_v12, %v128_v24  ;;  %144 = vst.msk [vmem:[#allocation8] sm:$0x1] %vm143_vm2, %v128_v24 }
 0x1aa   :  { %v132_v25 = vsel %vm131_vm3, %v130_v23, 8 }
 0x1ab   :  { %v133_v26 = vsel %vm95_vm1, %v132_v25, 2147483647 }
 0x1ac   :  { %v134_v27 = vrot.slane %v133_v26, 4 }
 0x1ae   :  { %vm135_vm4 = vcmp.lt.s32.totalorder %v133_v26, %v134_v27 }
 0x1af   :  { %v136_v28 = vsel %vm135_vm4, %v133_v26, %v134_v27 }
 0x1b0   :  { %v137_v29 = vrot.slane %v136_v28, 2 }
 0x1b2   :  { %vm138_vm5 = vcmp.lt.s32.totalorder %v136_v28, %v137_v29 }
 0x1b3   :  { %v139_v30 = vsel %vm138_vm5, %v136_v28, %v137_v29 }
 0x1b4   :  { %v140_v31 = vrot.slane %v139_v30, 1 }
 0x1b6   :  { %vm141_vm6 = vcmp.lt.s32.totalorder %v139_v30, %v140_v31 }
 0x1b7   :  { %v142_v32 = vsel %vm141_vm6, %v139_v30, %v140_v31 }
 0x1b8   :  { %148 = vst.msk [vmem:[#allocation10] sm:$0x1] %vm143_vm2, %v142_v32 }
 0x22a   :  { %v98_v33 = vpop.xlane.xlu0 %97 }
 0x22b   :  { %v99_v34 = vsub.f32 %v84_v12, %v98_v33 }
 0x22d   :  { %v100_v35 = vmul.f32 1.442695, %v99_v34 }
 0x22f   :  { %211 = vpow2.f32 %v100_v35 }
 0x239   :  { %v212_v36 = vpop.eup %211 }
 0x23a   :  { %v102_v37 = vsel %vm95_vm1, %v212_v36, 0.0 }
 0x23b   :  { %103 = vadd.xlane.f32.xlu1 %v102_v37 }
 0x23f   :  { %93 = vadd.xlane.f32.xlu1 %v92_v11 }
 0x2c8   :  { %v104_v38 = vpop.xlane.xlu1 %103 }
 0x2c9   :  { %213 = vlog2.f32 %v104_v38 }
 0x2cc   :  { %v94_v42 = vpop.xlane.xlu1 %93 }
 0x2d3   :  { %v214_v39 = vpop.eup %213 }
 0x2d4   :  { %v106_v40 = vmul.f32 0.6931472, %v214_v39 }
 0x2d6   :  { %v107_v41 = vadd.f32 %v106_v40, %v98_v33 }
 0x2d8   :  { %v108_v43 = vsub.f32 %v107_v41, %v94_v42 }
 0x2da   :  { %v110_v44 = vsel %vm109_vm7, %v108_v43, 0.0 }
 0x2db   :  { %111 = vadd.xlane.f32.xlu0 %v110_v44 }
 0x2dc   :  { %270 = shalt.err (!%p267_p6)
}
 0x2dd   :  { %s271_s17 = scalar_lea.hbm %s431_s3, 16 }
 0x2de   :  { %p272_p7 = scmp.ne.s32.totalorder %s431_s3, %s271_s17  ;;  %p275_p8 = scmp.lt.u32.totalorder %s271_s17, %s431_s3 }
 0x2e0   :  { %p277_p9 = pnand %p275_p8, %p272_p7 }
 0x2e2   :  { %280 = shalt.err (!%p277_p9)
}
 0x2e3   :  { %168 = dma.vmem_to_hbm [thread:$0]  %s166_s12, 16, %s431_s3, [#allocation9]  }
 0x2e4   :  { %s338_s24 = smov [#allocation10]  }
 0x2e5   :  { %s175_s25 = sshll.u32 %s338_s24, 4  ;;  %s176_s25 = int_to_ptr.vmem [resolvable:$true] %s175_s25 }
 0x2e6   :  { %s281_s26 = scalar_lea.vmem %s176_s25, 16  ;;  %s285_s27 = scalar_lea.vmem %s176_s25, 32 }
 0x2e7   :  { %p282_p10 = scmp.ne.s32.totalorder %s176_s25, %s281_s26  ;;  %p286_p11 = scmp.lt.s32.totalorder %s176_s25, %s176_s25 }
 0x2e8   :  { %p287_p12 = scmp.lt.s32.totalorder %s285_s27, %s281_s26 }
 0x2ea   :  { %p288_p13 = por %p287_p12, %p286_p11 }
 0x2ec   :  { %p289_p0 = pnand %p288_p13, %p282_p10 }
 0x2ee   :  { %292 = shalt.err (!%p289_p0)
}
 0x2ef   :  { %s293_s30 = scalar_lea.hbm %s432_s4, 16 }
 0x2f0   :  { %p294_p1 = scmp.ne.s32.totalorder %s432_s4, %s293_s30  ;;  %p297_p2 = scmp.lt.u32.totalorder %s293_s30, %s432_s4 }
 0x2f2   :  { %p299_p3 = pnand %p297_p2, %p294_p1 }
 0x2f4   :  { %302 = shalt.err (!%p299_p3)
}
 0x2f5   :  { %178 = dma.vmem_to_hbm [thread:$0]  %s176_s25, 16, %s432_s4, [#allocation9]   ;;  %vm121_vm8 = vcmask 0  }
 0x2f6   :  { %s339_s10 = smov [#allocation7]  }
 0x2f7   :  { %s155_s0 = sshll.u32 %s339_s10, 4  ;;  %s156_s0 = int_to_ptr.vmem [resolvable:$true] %s155_s0 }
 0x2f8   :  { %s303_s1 = scalar_lea.vmem %s156_s0, 16  ;;  %s307_s12 = scalar_lea.vmem %s156_s0, 32 }
 0x2f9   :  { %p304_p4 = scmp.ne.s32.totalorder %s156_s0, %s303_s1  ;;  %p308_p5 = scmp.lt.s32.totalorder %s156_s0, %s156_s0 }
 0x2fa   :  { %p309_p6 = scmp.lt.s32.totalorder %s307_s12, %s303_s1 }
 0x2fc   :  { %p310_p7 = por %p309_p6, %p308_p5 }
 0x2fe   :  { %p311_p8 = pnand %p310_p7, %p304_p4 }
 0x368   :  { %v112_v45 = vpop.xlane.xlu0 %111 }
 0x369   :  { %v113_v46 = vrot.slane %v112_v45, 4 }
 0x36b   :  { %v114_v47 = vadd.f32 %v113_v46, %v112_v45 }
 0x36d   :  { %v115_v48 = vrot.slane %v114_v47, 2 }
 0x36f   :  { %v116_v49 = vadd.f32 %v115_v48, %v114_v47 }
 0x371   :  { %v117_v50 = vrot.slane %v116_v49, 1 }
 0x373   :  { %v118_v51 = vadd.f32 %v117_v50, %v116_v49 }
 0x375   :  { %200 = vpush %v118_v51 }
 0x3a6   :  { %s201_s11 = spop %200 }
 0x3a7   :  { %v120_v52 = vstv %s201_s11 }
 0x3a8   :  { %122 = vst.msk [vmem:[#allocation7] sm:$0x1] %vm121_vm8, %v120_v52 }
 0x3a9   :  { %314 = shalt.err (!%p311_p8)
}
 0x3aa   :  { %s315_s14 = scalar_lea.hbm %s430_s2, 16 }
 0x3ab   :  { %p316_p9 = scmp.ne.s32.totalorder %s430_s2, %s315_s14  ;;  %p319_p10 = scmp.lt.u32.totalorder %s315_s14, %s430_s2 }
 0x3ad   :  { %p321_p11 = pnand %p319_p10, %p316_p9 }
 0x3af   :  { %324 = shalt.err (!%p321_p11)
}
 0x3b0   :  { %158 = dma.vmem_to_hbm [thread:$0]  %s156_s0, 16, %s430_s2, [#allocation4]  }
 0x3b1   :  { %329 = dma.done.wait [#allocation4], 16  }
 0x3b2   :  { %330 = vsyncadd [#allocation4], 4294967280 }
 0x3b3   :  { %331 = dma.done.wait [#allocation9], 32  }
 0x3b4   :  { %332 = vsyncadd [#allocation9], 4294967264 }
 0x3b5   :  { %188 = vsyncpa [#allocation3], 1 }
 0x3b6   :  { %189 = vsyncpa [#allocation6], 1 }
 0x3b7   :  { %190 = vsyncpa [#allocation4], 1 }
 0x3b8   :  { %191 = vsyncpa [#allocation9], 1 }

</bundles_post_ra>
